<compile_context>
chip_gen: v7x
topology: tpu7x:2x2x1
jax: 0.10.0
libtpu: 0.0.40
codegen_flags: <defaults>
</compile_context>

<pallas_src>
import functools

import jax
import jax.numpy as jnp
from jax import lax
from jax.experimental import pallas as pl
from jax.experimental.pallas import tpu as pltpu

_SUB = 8
_LANES = 128
_SUB_ELEMS = _SUB * _LANES      # elements per (8, 128) slab (= one f32 vreg)
_STRIP = 32                     # slabs per fused compute/reduce strip (128 KiB f32)


def _round_up(x, m):
    return ((x + m - 1) // m) * m


def _cdiv(a, b):
    return -(-a // b)


def _bce_iou_kernel(p_ref, r_ref, out_ref, *, issigmoid, binary_target,
                    need_mask, chunk_sub, n_cps, n_sub, bb, strip):
    """Accumulate per-sample partial sums into the resident output block.

    Block shapes:
      p_ref, r_ref : (bb, chunk_sub, 8, 128)
      out_ref      : (bb, 1, 3, 8, 128) -> [bce partial, I partial, (p+r) partial]
    """
    s = pl.program_id(0)          # chunk-split slot (keeps v7x's 2nd core busy)
    c = pl.program_id(2)          # chunk within the split (reduction axis, last)

    @pl.when(c == 0)
    def _init():
        out_ref[...] = jnp.zeros_like(out_ref)

    # First per-sample slab index covered by this chunk slot.
    base_slab = (s * n_cps + c) * chunk_sub

    def accumulate(b, off, count):
        # Partial sums for `count` slabs starting at block-local slab `off`
        # of packed sample `b`.  Strip shape: (count, 8, 128).
        p = p_ref[b, pl.ds(off, count)].astype(jnp.float32)
        r = r_ref[b, pl.ds(off, count)].astype(jnp.float32)
        if issigmoid:
            p = jax.nn.sigmoid(p)
        if binary_target:
            # Exact for r in {0, 1}: one clamped log per element (halves EUP work).
            bce = -jnp.maximum(jnp.log(jnp.where(r > 0.5, p, 1.0 - p)), -100.0)
        else:
            # Full torch BCELoss formula (supports soft targets).
            log_p = jnp.maximum(jnp.log(p), -100.0)
            log_1mp = jnp.maximum(jnp.log(1.0 - p), -100.0)
            bce = -(r * log_p + (1.0 - r) * log_1mp)
        rp = r * p
        rps = r + p
        if need_mask:
            # Kill contributions of slab slots past the real per-sample extent
            # (ragged last chunk / phantom split slot).  Select - not multiply -
            # so garbage/NaN in the undefined region never propagates.
            slab = off + base_slab + lax.broadcasted_iota(
                jnp.int32, (count, _SUB, _LANES), 0)
            valid = slab < n_sub
            zero = jnp.zeros_like(bce)
            bce = jnp.where(valid, bce, zero)
            rp = jnp.where(valid, rp, zero)
            rps = jnp.where(valid, rps, zero)
        # Pure VPU vreg adds into the resident accumulator block; the expensive
        # cross-lane reductions are deferred to the tiny JAX epilogue.
        out_ref[b, 0, 0] += jnp.sum(bce, axis=0)
        out_ref[b, 0, 1] += jnp.sum(rp, axis=0)
        out_ref[b, 0, 2] += jnp.sum(rps, axis=0)

    n_full = chunk_sub // strip
    tail = chunk_sub - n_full * strip

    if n_full:
        def full_body(i, carry):
            if bb == 1:
                b, j = 0, i
            else:
                b = i // n_full
                j = i - b * n_full
            accumulate(b, pl.multiple_of(j * strip, strip), strip)
            return carry
        lax.fori_loop(0, bb * n_full, full_body, 0)

    if tail:
        def tail_body(b, carry):
            accumulate(b, n_full * strip, tail)
            return carry
        lax.fori_loop(0, bb, tail_body, 0)


def bce_iou_loss(pmask, rmask, *, size_average=True, issigmoid=False,
                 binary_target=True, block_bytes=4 << 20):
    """Pallas implementation of BCE_IOU.forward (size_average=True path)."""
    # TODO(synk): size_average=False (unreduced per-sample) path not implemented.
    assert size_average, "only the default size_average=True path is implemented"
    B, C, H, W = pmask.shape
    n = C * H * W

    p_itemsize = jnp.dtype(pmask.dtype).itemsize
    r_itemsize = jnp.dtype(rmask.dtype).itemsize
    slab_bytes = _SUB_ELEMS * max(p_itemsize, r_itemsize)

    # Lane-dense view: each sample as (n_sub, 8, 128) slabs.  Zero-copy when n
    # is a multiple of 1024; otherwise pad with (p, r) values that contribute
    # exactly 0 to every partial sum (rare fallback).
    p_flat = pmask.reshape(B, n)
    r_flat = rmask.reshape(B, n)
    n_pad = _round_up(n, _SUB_ELEMS)
    if n_pad != n:
        pad = n_pad - n
        p_flat = jnp.pad(p_flat, ((0, 0), (0, pad)),
                         constant_values=(-1e4 if issigmoid else 0.0))
        r_flat = jnp.pad(r_flat, ((0, 0), (0, pad)))
    n_sub = n_pad // _SUB_ELEMS
    p4 = p_flat.reshape(B, n_sub, _SUB, _LANES)
    r4 = r_flat.reshape(B, n_sub, _SUB, _LANES)

    # --- Tiling: ~block_bytes per input block (2-4 MiB HBM sweet spot) -------
    target_sub = max(1, block_bytes // slab_bytes)
    if n_sub <= target_sub:
        # Small samples: whole sample per chunk, pack bb samples per block.
        chunk_sub, n_chunks = n_sub, 1
        bb_cap = max(1, min(B, 64, target_sub // n_sub))
        bb = max(d for d in range(1, bb_cap + 1) if B % d == 0)
    else:
        # Large samples: chunk the slab axis (never exceeds the array extent).
        bb = 1
        chunk_sub = _cdiv(n_sub, _cdiv(n_sub, target_sub))
        n_chunks = _cdiv(n_sub, chunk_sub)
    n_groups = B // bb

    # v7x: if only one parallel (group) slot exists, split the chunk range in
    # two so the second TensorCore isn't idle.  Harmless on v5e/v6e.
    n_split = 2 if (n_groups == 1 and n_chunks >= 2) else 1
    n_cps = _cdiv(n_chunks, n_split)
    # Ragged / phantom slab slots are masked in-kernel instead of padded in HBM.
    need_mask = (n_split * n_cps * chunk_sub) != n_sub
    last_chunk = n_chunks - 1

    def in_map(sp, g, c):
        # Clamp phantom split slots onto the last real chunk; their
        # contributions are fully masked inside the kernel.
        return (g, jnp.minimum(sp * n_cps + c, last_chunk), 0, 0)

    def out_map(sp, g, c):
        return (g, sp, 0, 0, 0)

    in_block_bytes = bb * chunk_sub * _SUB_ELEMS * (p_itemsize + r_itemsize)
    out_block_bytes = bb * 3 * _SUB_ELEMS * 4
    # Double-buffered input/output blocks + strip-sized f32 temps + headroom.
    vmem_limit = int(min(max(16 << 20,
                             2 * in_block_bytes + 2 * out_block_bytes + (8 << 20)),
                         56 << 20))

    kernel = functools.partial(
        _bce_iou_kernel, issigmoid=issigmoid, binary_target=binary_target,
        need_mask=need_mask, chunk_sub=chunk_sub, n_cps=n_cps, n_sub=n_sub,
        bb=bb, strip=_STRIP)

    partials = pl.pallas_call(
        kernel,
        out_shape=jax.ShapeDtypeStruct((B, n_split, 3, _SUB, _LANES), jnp.float32),
        grid_spec=pltpu.PrefetchScalarGridSpec(
            num_scalar_prefetch=0,
            grid=(n_split, n_groups, n_cps),
            in_specs=[
                pl.BlockSpec((bb, chunk_sub, _SUB, _LANES), in_map),
                pl.BlockSpec((bb, chunk_sub, _SUB, _LANES), in_map),
            ],
            out_specs=pl.BlockSpec((bb, 1, 3, _SUB, _LANES), out_map),
        ),
        compiler_params=pltpu.CompilerParams(
            dimension_semantics=("parallel", "parallel", "arbitrary"),
            vmem_limit_bytes=vmem_limit,
        ),
    )(p4, r4)

    # Tiny epilogue reductions in plain JAX (keeps XLU work out of the kernel).
    sums = jnp.sum(partials, axis=(1, 3, 4))               # (B, 3)
    bce_sum, inter, rp_sum = sums[:, 0], sums[:, 1], sums[:, 2]
    union = rp_sum - inter            # NaN for an all-zero sample (matches torch)
    loss_ce = jnp.sum(bce_sum) / float(B * n)
    loss_iou = jnp.mean(1.0 - inter / union)
    return loss_ce + loss_iou


def _reference(pmask, rmask, issigmoid=False):
    """Pure-JAX reference mirroring torch BCELoss(mean) + BASNet IoU loss."""
    p = pmask.astype(jnp.float32)
    r = rmask.astype(jnp.float32)
    if issigmoid:
        p = jax.nn.sigmoid(p)
    log_p = jnp.maximum(jnp.log(p), -100.0)
    log_1mp = jnp.maximum(jnp.log(1.0 - p), -100.0)
    bce = jnp.mean(-(r * log_p + (1.0 - r) * log_1mp))
    inter = jnp.sum(r * p, axis=(1, 2, 3))
    union = jnp.sum(r, axis=(1, 2, 3)) + jnp.sum(p, axis=(1, 2, 3)) - inter
    iou = jnp.mean(1.0 - inter / union)
    return bce + iou


if __name__ == "__main__":
    key = jax.random.PRNGKey(0)
    k = jax.random.split(key, 8)

    def check(name, got, want, rtol=1e-4, atol=1e-5):
        got = jax.block_until_ready(got)
        assert bool(jnp.isfinite(want)), (name, want)
        assert jnp.allclose(got, want, rtol=rtol, atol=atol), (name, got, want)

    # Case 1: default path - probabilities + binary mask, samples packed per block.
    B, C, H, W = 2, 4, 16, 16
    p1 = jax.nn.sigmoid(jax.random.normal(k[0], (B, C, H, W), dtype=jnp.float32))
    r1 = (jax.random.uniform(k[1], (B, C, H, W)) > 0.5).astype(jnp.float32)
    check("case1", bce_iou_loss(p1, r1), _reference(p1, r1))

    # Case 2: bf16 logits (issigmoid=True), B=1, slab count not chunk-aligned:
    #   2a) default 4 MiB blocks -> single chunk, full-strip + tail path
    #   2b) tiny blocks          -> multi-chunk + v7x chunk-split + masked phantom slot
    p2 = (2.0 * jax.random.normal(k[2], (1, 3, 120, 128))).astype(jnp.bfloat16)
    r2 = (jax.random.uniform(k[3], (1, 3, 120, 128)) > 0.5).astype(jnp.float32)
    ref2 = _reference(p2, r2, issigmoid=True)
    check("case2a", bce_iou_loss(p2, r2, issigmoid=True), ref2)
    check("case2b", bce_iou_loss(p2, r2, issigmoid=True, block_bytes=64 << 10), ref2)

    # Case 3: soft targets -> exact two-log torch formula.
    p3 = jax.nn.sigmoid(jax.random.normal(k[4], (2, 1, 16, 64), dtype=jnp.float32))
    r3 = jax.random.uniform(k[5], (2, 1, 16, 64), dtype=jnp.float32)
    check("case3", bce_iou_loss(p3, r3, binary_target=False), _reference(p3, r3))

    # Case 4: element count not a multiple of 1024 -> zero-contribution pad path.
    p4_ = jax.nn.sigmoid(jax.random.normal(k[6], (2, 1, 10, 30), dtype=jnp.float32))
    r4_ = (jax.random.uniform(k[7], (2, 1, 10, 30)) > 0.5).astype(jnp.float32)
    check("case4", bce_iou_loss(p4_, r4_), _reference(p4_, r4_))

    print("KERNEL_OK")
</pallas_src>

<mosaic_0001>
module attributes {stable_mosaic.version = 11 : i64} {
  func.func @_bce_iou_kernel(%arg0: i32, %arg1: i32, %arg2: i32, %arg3: memref<2x1x8x128xf32, #tpu.memory_space<vmem>>, %arg4: memref<2x1x8x128xf32, #tpu.memory_space<vmem>>, %arg5: memref<2x1x3x8x128xf32, #tpu.memory_space<vmem>>) attributes {dimension_semantics = [#tpu.dimension_semantics<parallel>, #tpu.dimension_semantics<parallel>, #tpu.dimension_semantics<arbitrary>], iteration_bounds = array<i64: 1, 1, 1>, scalar_prefetch = 0 : i64, scratch_operands = 0 : i64, tpu.core_type = #tpu.core_type<tc>, window_params = [{transform_indices = @transform_0, window_bounds = array<i64: 2, 1, 8, 128>}, {transform_indices = @transform_1, window_bounds = array<i64: 2, 1, 8, 128>}, {transform_indices = @transform_2, window_bounds = array<i64: 2, 1, 3, 8, 128>}]} {
    %c0_i32 = arith.constant 0 : i32
    %0 = arith.cmpi eq, %arg2, %c0_i32 : i32
    %1 = arith.extui %0 : i1 to i32
    %c0_i32_0 = arith.constant 0 : i32
    %2 = arith.cmpi ne, %1, %c0_i32_0 : i32
    scf.if %2 {
      %cst = arith.constant 0.000000e+00 : f32
      %4 = vector.broadcast %cst : f32 to vector<2x1x3x8x128xf32>
      %c0 = arith.constant 0 : index
      %c0_3 = arith.constant 0 : index
      %c0_4 = arith.constant 0 : index
      %c0_5 = arith.constant 0 : index
      %c0_6 = arith.constant 0 : index
      %5 = vector.load %arg5[%c0, %c0_3, %c0_4, %c0_5, %c0_6] : memref<2x1x3x8x128xf32, #tpu.memory_space<vmem>>, vector<2x1x3x8x128xf32>
      tpu.vector_store %arg5[%c0, %c0_3, %c0_4, %c0_5, %c0_6], %4 {strides = array<i32>} : memref<2x1x3x8x128xf32, #tpu.memory_space<vmem>>, vector<2x1x3x8x128xf32>,
    } else {
    }
    %c0_i32_1 = arith.constant 0 : i32
    %c2_i32 = arith.constant 2 : i32
    %3 = arith.addi %c0_i32_1, %c2_i32 : i32
    %c1_i32 = arith.constant 1 : i32
    scf.for %arg6 = %c0_i32_1 to %3 step %c1_i32  : i32 {
      %4 = arith.index_cast %arg6 : i32 to index
      %c0 = arith.constant 0 : index
      %c0_3 = arith.constant 0 : index
      %c0_4 = arith.constant 0 : index
      %5 = vector.load %arg3[%4, %c0, %c0_3, %c0_4] : memref<2x1x8x128xf32, #tpu.memory_space<vmem>>, vector<1x1x8x128xf32>
      %6 = vector.shape_cast %5 : vector<1x1x8x128xf32> to vector<1x8x128xf32>
      %7 = arith.index_cast %arg6 : i32 to index
      %c0_5 = arith.constant 0 : index
      %c0_6 = arith.constant 0 : index
      %c0_7 = arith.constant 0 : index
      %8 = vector.load %arg4[%7, %c0_5, %c0_6, %c0_7] : memref<2x1x8x128xf32, #tpu.memory_space<vmem>>, vector<1x1x8x128xf32>
      %9 = vector.shape_cast %8 : vector<1x1x8x128xf32> to vector<1x8x128xf32>
      %cst = arith.constant 5.000000e-01 : f32
      %10 = vector.broadcast %cst : f32 to vector<1x8x128xf32>
      %11 = arith.cmpf ogt, %9, %10 : vector<1x8x128xf32>
      %cst_8 = arith.constant 1.000000e+00 : f32
      %12 = vector.broadcast %cst_8 : f32 to vector<1x8x128xf32>
      %13 = arith.subf %12, %6 : vector<1x8x128xf32>
      %14 = arith.select %11, %6, %13 : vector<1x8x128xi1>, vector<1x8x128xf32>
      %15 = math.log %14 : vector<1x8x128xf32>
      %cst_9 = arith.constant -1.000000e+02 : f32
      %16 = vector.broadcast %cst_9 : f32 to vector<1x8x128xf32>
      %17 = arith.maximumf %15, %16 : vector<1x8x128xf32>
      %cst_10 = arith.constant 0.000000e+00 : f32
      %18 = vector.broadcast %cst_10 : f32 to vector<1x8x128xf32>
      %19 = arith.subf %18, %17 : vector<1x8x128xf32>
      %20 = arith.mulf %9, %6 : vector<1x8x128xf32>
      %21 = arith.addf %9, %6 : vector<1x8x128xf32>
      %22 = arith.index_cast %arg6 : i32 to index
      %c0_11 = arith.constant 0 : index
      %c0_12 = arith.constant 0 : index
      %c0_13 = arith.constant 0 : index
      %c0_14 = arith.constant 0 : index
      %23 = vector.load %arg5[%22, %c0_11, %c0_12, %c0_13, %c0_14] : memref<2x1x3x8x128xf32, #tpu.memory_space<vmem>>, vector<1x1x1x8x128xf32>
      %24 = vector.shape_cast %23 : vector<1x1x1x8x128xf32> to vector<8x128xf32>
      %cst_15 = arith.constant dense<0.000000e+00> : vector<8x128xf32>
      %25 = vector.multi_reduction <add>, %19, %cst_15 [0] : vector<1x8x128xf32> to vector<8x128xf32>
      %26 = arith.addf %24, %25 : vector<8x128xf32>
      %27 = arith.index_cast %arg6 : i32 to index
      %c0_16 = arith.constant 0 : index
      %c0_17 = arith.constant 0 : index
      %c0_18 = arith.constant 0 : index
      %c0_19 = arith.constant 0 : index
      %28 = vector.load %arg5[%27, %c0_16, %c0_17, %c0_18, %c0_19] : memref<2x1x3x8x128xf32, #tpu.memory_space<vmem>>, vector<1x1x1x8x128xf32>
      %29 = vector.shape_cast %28 : vector<1x1x1x8x128xf32> to vector<8x128xf32>
      %30 = vector.shape_cast %26 : vector<8x128xf32> to vector<1x1x1x8x128xf32>
      tpu.vector_store %arg5[%27, %c0_16, %c0_17, %c0_18, %c0_19], %30 {strides = array<i32>} : memref<2x1x3x8x128xf32, #tpu.memory_space<vmem>>, vector<1x1x1x8x128xf32>,
      %31 = arith.index_cast %arg6 : i32 to index
      %c0_20 = arith.constant 0 : index
      %c1 = arith.constant 1 : index
      %c0_21 = arith.constant 0 : index
      %c0_22 = arith.constant 0 : index
      %32 = vector.load %arg5[%31, %c0_20, %c1, %c0_21, %c0_22] : memref<2x1x3x8x128xf32, #tpu.memory_space<vmem>>, vector<1x1x1x8x128xf32>
      %33 = vector.shape_cast %32 : vector<1x1x1x8x128xf32> to vector<8x128xf32>
      %cst_23 = arith.constant dense<0.000000e+00> : vector<8x128xf32>
      %34 = vector.multi_reduction <add>, %20, %cst_23 [0] : vector<1x8x128xf32> to vector<8x128xf32>
      %35 = arith.addf %33, %34 : vector<8x128xf32>
      %36 = arith.index_cast %arg6 : i32 to index
      %c0_24 = arith.constant 0 : index
      %c1_25 = arith.constant 1 : index
      %c0_26 = arith.constant 0 : index
      %c0_27 = arith.constant 0 : index
      %37 = vector.load %arg5[%36, %c0_24, %c1_25, %c0_26, %c0_27] : memref<2x1x3x8x128xf32, #tpu.memory_space<vmem>>, vector<1x1x1x8x128xf32>
      %38 = vector.shape_cast %37 : vector<1x1x1x8x128xf32> to vector<8x128xf32>
      %39 = vector.shape_cast %35 : vector<8x128xf32> to vector<1x1x1x8x128xf32>
      tpu.vector_store %arg5[%36, %c0_24, %c1_25, %c0_26, %c0_27], %39 {strides = array<i32>} : memref<2x1x3x8x128xf32, #tpu.memory_space<vmem>>, vector<1x1x1x8x128xf32>,
      %40 = arith.index_cast %arg6 : i32 to index
      %c0_28 = arith.constant 0 : index
      %c2 = arith.constant 2 : index
      %c0_29 = arith.constant 0 : index
      %c0_30 = arith.constant 0 : index
      %41 = vector.load %arg5[%40, %c0_28, %c2, %c0_29, %c0_30] : memref<2x1x3x8x128xf32, #tpu.memory_space<vmem>>, vector<1x1x1x8x128xf32>
      %42 = vector.shape_cast %41 : vector<1x1x1x8x128xf32> to vector<8x128xf32>
      %cst_31 = arith.constant dense<0.000000e+00> : vector<8x128xf32>
      %43 = vector.multi_reduction <add>, %21, %cst_31 [0] : vector<1x8x128xf32> to vector<8x128xf32>
      %44 = arith.addf %42, %43 : vector<8x128xf32>
      %45 = arith.index_cast %arg6 : i32 to index
      %c0_32 = arith.constant 0 : index
      %c2_33 = arith.constant 2 : index
      %c0_34 = arith.constant 0 : index
      %c0_35 = arith.constant 0 : index
      %46 = vector.load %arg5[%45, %c0_32, %c2_33, %c0_34, %c0_35] : memref<2x1x3x8x128xf32, #tpu.memory_space<vmem>>, vector<1x1x1x8x128xf32>
      %47 = vector.shape_cast %46 : vector<1x1x1x8x128xf32> to vector<8x128xf32>
      %48 = vector.shape_cast %44 : vector<8x128xf32> to vector<1x1x1x8x128xf32>
      tpu.vector_store %arg5[%45, %c0_32, %c2_33, %c0_34, %c0_35], %48 {strides = array<i32>} : memref<2x1x3x8x128xf32, #tpu.memory_space<vmem>>, vector<1x1x1x8x128xf32>,
    }
    %c2_i32_2 = arith.constant 2 : i32
    return
  }
  func.func @transform_0(%arg0: i32, %arg1: i32, %arg2: i32) -> (i32, i32, i32, i32) {
    %c1_i32 = arith.constant 1 : i32
    %0 = arith.muli %arg0, %c1_i32 : i32
    %1 = arith.addi %0, %arg2 : i32
    %c0_i32 = arith.constant 0 : i32
    %2 = arith.minsi %1, %c0_i32 : i32
    %c0_i32_0 = arith.constant 0 : i32
    %c0_i32_1 = arith.constant 0 : i32
    %c0_i32_2 = arith.constant 0 : i32
    return %arg1, %2, %c0_i32_0, %c0_i32_1 : i32, i32, i32, i32
  }
  func.func @transform_1(%arg0: i32, %arg1: i32, %arg2: i32) -> (i32, i32, i32, i32) {
    %c1_i32 = arith.constant 1 : i32
    %0 = arith.muli %arg0, %c1_i32 : i32
    %1 = arith.addi %0, %arg2 : i32
    %c0_i32 = arith.constant 0 : i32
    %2 = arith.minsi %1, %c0_i32 : i32
    %c0_i32_0 = arith.constant 0 : i32
    %c0_i32_1 = arith.constant 0 : i32
    %c0_i32_2 = arith.constant 0 : i32
    return %arg1, %2, %c0_i32_0, %c0_i32_1 : i32, i32, i32, i32
  }
  func.func @transform_2(%arg0: i32, %arg1: i32, %arg2: i32) -> (i32, i32, i32, i32, i32) {
    %c0_i32 = arith.constant 0 : i32
    %c0_i32_0 = arith.constant 0 : i32
    %c0_i32_1 = arith.constant 0 : i32
    %c0_i32_2 = arith.constant 0 : i32
    return %arg1, %arg0, %c0_i32, %c0_i32_0, %c0_i32_1 : i32, i32, i32, i32, i32
  }
}

</mosaic_0001>

<bundles_post_ra>
// kernel: tpu_custom_call.1
= control target key start
LH: loop header
LB: loop body
LE: loop exit
PB: predicated region body
PF: predicated region fallthrough
CT: control target
= control target key end

     0   :  { %7 = vsyncpa [#allocation3], 0  ;;  %s320_s0 = inlined_call_operand.hbm [shape: f32[2,1,8,128], index: 0, kind: input, shape index: {}]   ;;  %s321_s1 = inlined_call_operand.hbm [shape: f32[2,1,8,128], index: 1, kind: input, shape index: {}]   ;;  %s322_s2 = inlined_call_operand.hbm [shape: f32[2,1,3,8,128], index: 2, kind: output, shape index: {}]  }
   0x1   :  { %8 = vsyncpa [#allocation6], 0 }
   0x2   :  { %9 = vsyncpa [#allocation4], 0  ;;  %s244_s9 = smov [#allocation2]   ;;  %s164_s13 = scalar_lea.hbm %s320_s0, 256 }
   0x3   :  { %s20_s10 = sshll.u32 %s244_s9, 4  ;;  %p165_p0 = scmp.ne.s32.totalorder %s320_s0, %s164_s13  ;;  %s21_s10 = int_to_ptr.vmem [resolvable:$true] %s20_s10 }
   0x4   :  { %p168_p1 = scmp.lt.u32.totalorder %s164_s13, %s320_s0 }
   0x6   :  { %p170_p2 = pnand %p168_p1, %p165_p0 }
   0x8   :  { %173 = shalt.err (!%p170_p2)
}
   0x9   :  { %s174_s18 = scalar_lea.vmem %s21_s10, 256  ;;  %p179_p4 = scmp.lt.s32.totalorder %s21_s10, %s21_s10 }
   0xa   :  { %p175_p3 = scmp.ne.s32.totalorder %s21_s10, %s174_s18  ;;  %p180_p5 = scmp.lt.s32.totalorder %s174_s18, %s174_s18 }
   0xc   :  { %p181_p6 = por %p180_p5, %p179_p4 }
   0xe   :  { %p182_p7 = pnand %p181_p6, %p175_p3 }
  0x10   :  { %185 = shalt.err (!%p182_p7)
}
  0x11   :  { %s245_s19 = smov 128   ;;  %s246_s20 = smov 8  }
  0x12   :  { %26 = dma.hbm_to_vmem [thread:$0]  %s320_s0, 256, %s21_s10, [#allocation3], %s245_s19, %s245_s19, %s246_s20  }
  0x13   :  { %s247_s23 = smov [#allocation5]   ;;  %s186_s27 = scalar_lea.hbm %s321_s1, 256 }
  0x14   :  { %s37_s24 = sshll.u32 %s247_s23, 4  ;;  %p187_p8 = scmp.ne.s32.totalorder %s321_s1, %s186_s27  ;;  %s38_s24 = int_to_ptr.vmem [resolvable:$true] %s37_s24 }
  0x15   :  { %p190_p9 = scmp.lt.u32.totalorder %s186_s27, %s321_s1 }
  0x17   :  { %p192_p10 = pnand %p190_p9, %p187_p8 }
  0x19   :  { %195 = shalt.err (!%p192_p10)
}
  0x1a   :  { %s196_s4 = scalar_lea.vmem %s38_s24, 256  ;;  %p201_p12 = scmp.lt.s32.totalorder %s38_s24, %s38_s24 }
  0x1b   :  { %p197_p11 = scmp.ne.s32.totalorder %s38_s24, %s196_s4  ;;  %p202_p13 = scmp.lt.s32.totalorder %s196_s4, %s196_s4 }
  0x1d   :  { %p203_p0 = por %p202_p13, %p201_p12 }
  0x1f   :  { %p204_p1 = pnand %p203_p0, %p197_p11 }
  0x21   :  { %207 = shalt.err (!%p204_p1)
}
  0x22   :  { %43 = dma.hbm_to_vmem [thread:$0]  %s321_s1, 256, %s38_s24, [#allocation6], %s245_s19, %s245_s19, %s246_s20  }
  0x23   :  { %234 = dma.done.wait [#allocation3], 256  }
  0x24   :  { %235 = vsyncadd [#allocation3], 4294967040 }
  0x25   :  { %236 = dma.done.wait [#allocation6], 256  }
  0x26   :  { %237 = vsyncadd [#allocation6], 4294967040  ;;  %v248_v0 = vmov 0.0   ;;  %s295_s6 = smov 0  }
  0x27   :  { %60 = vst [vmem:[#allocation7] sm:$0xff] %v248_v0  ;;  %61 = vst [vmem:[#allocation7 + $0x8] sm:$0xff] %v248_v0 }
  0x28   :  { %62 = vst [vmem:[#allocation7 + $0x10] sm:$0xff] %v248_v0  ;;  %63 = vst [vmem:[#allocation7 + $0x18] sm:$0xff] %v248_v0 }
  0x29   :  { %64 = vst [vmem:[#allocation7 + $0x20] sm:$0xff] %v248_v0  ;;  %65 = vst [vmem:[#allocation7 + $0x28] sm:$0xff] %v248_v0 }
  0x2a LB: > { %s143_s1 = sshll.u32 %s242_s6, 3  ;;  %s86_s7 = smul.u32 24, %s242_s6  ;;  %s242_s6 = sphi %s295_s6, %s71_s6  }
  0x2b   : > { %s73_s8 = scalar_lea.vmem [#allocation2], %s143_s1  ;;  %s75_s9 = scalar_lea.vmem [#allocation5], %s143_s1 }
  0x2c   : > { %v74_v1 = vld [vmem:[%s73_s8] sm:$0xff]  ;;  %s87_s10 = scalar_lea.vmem [#allocation7], %s86_s7  ;;  %s71_s6 = sadd.s32 1, %s242_s6  }
  0x2d   : > { %v76_v2 = vld [vmem:[%s75_s9] sm:$0xff]  ;;  %v78_v3 = vsub.f32 1.0, %v74_v1  ;;  %p68_p2 = scmp.ge.s32.totalorder %s71_s6, 2  }
  0x2e   : > { %vm77_vm0 = vcmp.gt.f32.partialorder %v76_v2, 0.5  ;;  %v84_v4 = vmul.f32 %v76_v2, %v74_v1  ;;  %v85_v6 = vadd.f32 %v76_v2, %v74_v1  ;;  %s249_s11 = smov (%p68_p2), [#allocation7]  }
  0x2f   : > { %v79_v8 = vsel %vm77_vm0, %v74_v1, %v78_v3  ;;  %s109_s12 = sshll.u32 (%p68_p2), %s249_s11, 4  ;;  %s110_s12 = int_to_ptr.vmem [resolvable:$true] %s109_s12 }
  0x30   : > { %v144_v5 = vld [vmem:[%s87_s10 + $0x8] sm:$0xff]  ;;  %v146_v7 = vld [vmem:[%s87_s10 + $0x10] sm:$0xff]  ;;  %162 = vlog2.f32 %v79_v8  ;;  %v88_v14 = vld [vmem:[%s87_s10] sm:$0xff]  ;;  %s208_s13 = scalar_lea.vmem (%p68_p2), %s110_s12, 768  ;;  %p213_p4 = scmp.lt.s32.totalorder (%p68_p2), %s110_s12, %s110_s12 }
  0x31   : > { %v96_v9 = vadd.f32 %v144_v5, %v84_v4  ;;  %v102_v10 = vadd.f32 %v146_v7, %v85_v6  ;;  %p209_p3 = scmp.ne.s32.totalorder (%p68_p2), %s110_s12, %s208_s13  ;;  %p214_p5 = scmp.lt.s32.totalorder (%p68_p2), %s208_s13, %s208_s13 }
  0x33   : > { %145 = vst [vmem:[%s87_s10 + $0x8] sm:$0xff] %v96_v9  ;;  %147 = vst [vmem:[%s87_s10 + $0x10] sm:$0xff] %v102_v10  ;;  %p215_p6 = por (%p68_p2), %p214_p5, %p213_p4 }
  0x35   :  { %p216_p7 = pnand (%p68_p2), %p215_p6, %p209_p3 }
  0x3a   : > { %v163_v11 = vpop.eup %162 }
  0x3b   : > { %v81_v12 = vmul.f32 0.6931472, %v163_v11 }
  0x3d   : > { %v82_v13 = vmax.f32 %v81_v12, -100.0  ;;  %70 = sbr.rel (!%p68_p2) target bundleno = 42 (0x2a), region = 54 }
  0x3f   : > { %v83_v15 = vsub.f32 0.0, %v82_v13 }
  0x41   : > { %v90_v16 = vadd.f32 %v88_v14, %v83_v15 }
  0x43   : > { %91 = vst [vmem:[%s87_s10] sm:$0xff] %v90_v16 }
  0x44   :  { %219 = shalt.err (!%p216_p7)
}
  0x45   :  { %s220_s16 = scalar_lea.hbm %s322_s2, 768 }
  0x46   :  { %p221_p8 = scmp.ne.s32.totalorder %s322_s2, %s220_s16  ;;  %p224_p9 = scmp.lt.u32.totalorder %s220_s16, %s322_s2 }
  0x48   :  { %p226_p10 = pnand %p224_p9, %p221_p8 }
  0x4a   :  { %229 = shalt.err (!%p226_p10)
}
  0x4b   :  { %115 = dma.vmem_to_hbm [thread:$0]  %s110_s12, 768, %s322_s2, [#allocation4], %s245_s19, %s245_s19, %s246_s20  }
  0x4c   :  { %238 = dma.done.wait [#allocation4], 768  }
  0x4d   :  { %239 = vsyncadd [#allocation4], 4294966528 }
  0x4e   :  { %119 = vsyncpa [#allocation3], 1 }
  0x4f   :  { %120 = vsyncpa [#allocation6], 1 }
  0x50   :  { %121 = vsyncpa [#allocation4], 1 }

</bundles_post_ra>
